<compile_context>
chip_gen: v7x
topology: tpu7x:2x2x1
jax: 0.10.0
libtpu: 0.0.40
codegen_flags: <defaults>
</compile_context>

<pallas_src>
import jax
import jax.numpy as jnp
from jax.experimental import pallas as pl
from jax.experimental.pallas import tpu as pltpu

NUM_CLASSES = 10
OUT_LANES = 128        # lane-dense padded output width (multiple of 128)
HIDDEN3_PAD = 128      # 64-wide hidden layer padded to full 128 lanes
IN_FEATURES = 784
MAX_TB = 1024          # max batch-tile rows
MASK_VALUE = -1e30     # baked into padded layer-4 bias lanes (>= NUM_CLASSES)


def _classifier_kernel(x_ref,
                       w1_ref, b1_ref,
                       w2_ref, b2_ref,
                       w3_ref, b3_ref,
                       w4_ref, b4_ref,
                       o_ref):
    # Layer 1: cast the f32 input tile to bf16 in-kernel (no extra HBM pass),
    # (TB,784)bf16 @ (784,256)bf16 -> f32 accumulate; bias+ReLU in f32.
    x = x_ref[...].astype(jnp.bfloat16)
    h = jnp.dot(x, w1_ref[...], preferred_element_type=jnp.float32)
    h = jnp.maximum(h + b1_ref[...], 0.0)

    # Layer 2: (TB,256) @ (256,128)
    h = jnp.dot(h.astype(jnp.bfloat16), w2_ref[...],
                preferred_element_type=jnp.float32)
    h = jnp.maximum(h + b2_ref[...], 0.0)

    # Layer 3: (TB,128) @ (128,128)  -- output lanes 64..127 are zero padding
    # (zero weights + zero bias -> ReLU keeps them exactly 0).
    h = jnp.dot(h.astype(jnp.bfloat16), w3_ref[...],
                preferred_element_type=jnp.float32)
    h = jnp.maximum(h + b3_ref[...], 0.0)

    # Layer 4: (TB,128) @ (128,128)  -- padded K rows are zero; padded output
    # lanes get MASK_VALUE from the bias, so no explicit iota/where is needed.
    logits = jnp.dot(h.astype(jnp.bfloat16), w4_ref[...],
                     preferred_element_type=jnp.float32)
    logits = logits + b4_ref[...]

    # log_softmax over the 128 lanes; padded lanes contribute exp(-huge) = 0.
    m = jnp.max(logits, axis=-1, keepdims=True)
    shifted = logits - m
    lse = jnp.log(jnp.sum(jnp.exp(shifted), axis=-1, keepdims=True))
    o_ref[...] = (shifted - lse).astype(o_ref.dtype)


def prepare_params(params):
    """One-time prep (outside the jitted forward): transpose PyTorch (out,in)
    weights to (in,out), pad layer 3 to 128 output lanes and layer 4 to
    128x128, bake the class mask into the layer-4 bias, cast matmul weights
    to bf16, keep biases in f32."""
    (w1, b1), (w2, b2), (w3, b3), (w4, b4) = params

    h3 = w3.shape[0]                       # 64 real hidden-3 units
    w3p = jnp.zeros((w3.shape[1], HIDDEN3_PAD), jnp.float32)
    w3p = w3p.at[:, :h3].set(w3.T)
    b3p = jnp.zeros((1, HIDDEN3_PAD), jnp.float32)
    b3p = b3p.at[:, :h3].set(b3)

    w4p = jnp.zeros((HIDDEN3_PAD, OUT_LANES), jnp.float32)
    w4p = w4p.at[:h3, :NUM_CLASSES].set(w4.T)
    b4p = jnp.full((1, OUT_LANES), MASK_VALUE, jnp.float32)
    b4p = b4p.at[:, :NUM_CLASSES].set(b4)

    return (w1.T.astype(jnp.bfloat16), b1.reshape(1, -1).astype(jnp.float32),
            w2.T.astype(jnp.bfloat16), b2.reshape(1, -1).astype(jnp.float32),
            w3p.astype(jnp.bfloat16), b3p,
            w4p.astype(jnp.bfloat16), b4p)


def _round_up(n, m):
    return ((n + m - 1) // m) * m


@jax.jit
def classifier_forward(x, prepared):
    """x: (B, 1, 28, 28) float32 NCHW.  Returns (B, 10) bf16 log-probabilities."""
    B = x.shape[0]
    # Same flattening order as torch .view(B, 784); reshape is layout-free and
    # the bf16 cast happens inside the kernel.
    x2d = x.reshape(B, IN_FEATURES)

    # Batch tiling: a single full-extent tile for small B (always layout-legal);
    # for larger B split into >= 2 grid steps (megacore / v7x 2-TC) with TB a
    # multiple of 16 (bf16 output sublane packing), capped at MAX_TB.
    if B <= 256:
        TB = B
    else:
        TB = min(MAX_TB, _round_up(pl.cdiv(B, 2), 16))
    grid = pl.cdiv(B, TB)   # ragged tail: reads clamped, rows >= B never written

    w1, b1, w2, b2, w3, b3, w4, b4 = prepared

    resident = lambda i: (0, 0)  # weights/biases: same block every grid step

    flops = 2 * B * (IN_FEATURES * 256 + 256 * 128
                     + 128 * HIDDEN3_PAD + HIDDEN3_PAD * OUT_LANES)
    bytes_accessed = (B * IN_FEATURES * 4 + B * OUT_LANES * 2
                      + sum(int(a.size) * a.dtype.itemsize
                            for a in (w1, b1, w2, b2, w3, b3, w4, b4)))

    out = pl.pallas_call(
        _classifier_kernel,
        out_shape=jax.ShapeDtypeStruct((B, OUT_LANES), jnp.bfloat16),
        grid=(grid,),
        in_specs=[
            pl.BlockSpec((TB, IN_FEATURES), lambda i: (i, 0)),
            pl.BlockSpec(w1.shape, resident),
            pl.BlockSpec(b1.shape, resident),
            pl.BlockSpec(w2.shape, resident),
            pl.BlockSpec(b2.shape, resident),
            pl.BlockSpec(w3.shape, resident),
            pl.BlockSpec(b3.shape, resident),
            pl.BlockSpec(w4.shape, resident),
            pl.BlockSpec(b4.shape, resident),
        ],
        out_specs=pl.BlockSpec((TB, OUT_LANES), lambda i: (i, 0)),
        compiler_params=pltpu.CompilerParams(
            dimension_semantics=("parallel",)),
        cost_estimate=pl.CostEstimate(
            flops=flops,
            transcendentals=B * (OUT_LANES + 1),
            bytes_accessed=bytes_accessed),
    )(x2d, w1, b1, w2, b2, w3, b3, w4, b4)

    return out[:, :NUM_CLASSES]


def init_params(key):
    """Deterministic init mirroring nn.Linear default (uniform ±1/sqrt(fan_in)).
    Stored in PyTorch layout: weight (out, in), bias (out,)."""
    sizes = [(784, 256), (256, 128), (128, 64), (64, 10)]
    params = []
    for (fan_in, fan_out) in sizes:
        key, kw, kb = jax.random.split(key, 3)
        bound = 1.0 / jnp.sqrt(fan_in)
        w = jax.random.uniform(kw, (fan_out, fan_in), jnp.float32, -bound, bound)
        b = jax.random.uniform(kb, (fan_out,), jnp.float32, -bound, bound)
        params.append((w, b))
    return params


def reference_forward(x, params):
    """Pure-JAX f32 reference for a sanity check."""
    B = x.shape[0]
    h = x.reshape(B, 784)
    (w1, b1), (w2, b2), (w3, b3), (w4, b4) = params
    h = jax.nn.relu(h @ w1.T + b1)
    h = jax.nn.relu(h @ w2.T + b2)
    h = jax.nn.relu(h @ w3.T + b3)
    logits = h @ w4.T + b4
    return jax.nn.log_softmax(logits, axis=1)


if __name__ == "__main__":
    key = jax.random.PRNGKey(0)
    key, kx = jax.random.split(key)

    B = 2
    x = jax.random.normal(kx, (B, 1, 28, 28), jnp.float32)  # NCHW, MNIST-like
    params = init_params(key)
    prepared = prepare_params(params)  # one-time; no per-call transposes/pads

    out = classifier_forward(x, prepared)
    out = jax.block_until_ready(out)

    ref = reference_forward(x, params)
    assert out.shape == (B, 10)
    out_f32 = out.astype(jnp.float32)
    # bf16 matmul inputs + bf16 output with f32 accumulation -> relaxed tol.
    assert jnp.max(jnp.abs(out_f32 - ref)) < 5e-2, jnp.max(jnp.abs(out_f32 - ref))
    # log-probs should sum to ~1 after exp (padded lanes excluded correctly).
    assert jnp.allclose(jnp.exp(out_f32).sum(axis=1), 1.0, atol=2e-2)

    print("KERNEL_OK")
</pallas_src>

<mosaic_0001>
module attributes {stable_mosaic.version = 11 : i64} {
  func.func @_classifier_kernel(%arg0: i32, %arg1: memref<2x784xf32, #tpu.memory_space<vmem>>, %arg2: memref<784x256xbf16, #tpu.memory_space<vmem>>, %arg3: memref<1x256xf32, #tpu.memory_space<vmem>>, %arg4: memref<256x128xbf16, #tpu.memory_space<vmem>>, %arg5: memref<1x128xf32, #tpu.memory_space<vmem>>, %arg6: memref<128x128xbf16, #tpu.memory_space<vmem>>, %arg7: memref<1x128xf32, #tpu.memory_space<vmem>>, %arg8: memref<128x128xbf16, #tpu.memory_space<vmem>>, %arg9: memref<1x128xf32, #tpu.memory_space<vmem>>, %arg10: memref<2x128xbf16, #tpu.memory_space<vmem>>) attributes {dimension_semantics = [#tpu.dimension_semantics<parallel>], iteration_bounds = array<i64: 1>, scalar_prefetch = 0 : i64, scratch_operands = 0 : i64, tpu.core_type = #tpu.core_type<tc>, window_params = [{transform_indices = @transform_0, window_bounds = array<i64: 2, 784>}, {pipeline_mode = #tpu.pipeline_mode<synchronous>, transform_indices = @transform_1, window_bounds = array<i64: 784, 256>}, {pipeline_mode = #tpu.pipeline_mode<synchronous>, transform_indices = @transform_2, window_bounds = array<i64: 1, 256>}, {pipeline_mode = #tpu.pipeline_mode<synchronous>, transform_indices = @transform_3, window_bounds = array<i64: 256, 128>}, {pipeline_mode = #tpu.pipeline_mode<synchronous>, transform_indices = @transform_4, window_bounds = array<i64: 1, 128>}, {pipeline_mode = #tpu.pipeline_mode<synchronous>, transform_indices = @transform_5, window_bounds = array<i64: 128, 128>}, {pipeline_mode = #tpu.pipeline_mode<synchronous>, transform_indices = @transform_6, window_bounds = array<i64: 1, 128>}, {pipeline_mode = #tpu.pipeline_mode<synchronous>, transform_indices = @transform_7, window_bounds = array<i64: 128, 128>}, {pipeline_mode = #tpu.pipeline_mode<synchronous>, transform_indices = @transform_8, window_bounds = array<i64: 1, 128>}, {transform_indices = @transform_9, window_bounds = array<i64: 2, 128>}]} {
    %c0 = arith.constant 0 : index
    %c0_0 = arith.constant 0 : index
    %0 = vector.load %arg1[%c0, %c0_0] : memref<2x784xf32, #tpu.memory_space<vmem>>, vector<2x784xf32>
    %1 = arith.truncf %0 : vector<2x784xf32> to vector<2x784xbf16>
    %c0_1 = arith.constant 0 : index
    %c0_2 = arith.constant 0 : index
    %2 = vector.load %arg2[%c0_1, %c0_2] : memref<784x256xbf16, #tpu.memory_space<vmem>>, vector<784x256xbf16>
    %cst = arith.constant dense<0.000000e+00> : vector<2x256xf32>
    %3 = tpu.matmul %1, %2, %cst {dimension_numbers = #tpu.dot_dimension_numbers<[1], [0], [0], [1], [0, 0, 1, 1], [], []>} : vector<2x784xbf16>, vector<784x256xbf16>, vector<2x256xf32> -> vector<2x256xf32>
    %c0_3 = arith.constant 0 : index
    %c0_4 = arith.constant 0 : index
    %4 = vector.load %arg3[%c0_3, %c0_4] : memref<1x256xf32, #tpu.memory_space<vmem>>, vector<1x256xf32>
    %5 = vector.broadcast %4 : vector<1x256xf32> to vector<2x256xf32>
    %6 = arith.addf %3, %5 : vector<2x256xf32>
    %cst_5 = arith.constant 0.000000e+00 : f32
    %7 = vector.broadcast %cst_5 : f32 to vector<2x256xf32>
    %8 = arith.maximumf %6, %7 : vector<2x256xf32>
    %9 = arith.truncf %8 : vector<2x256xf32> to vector<2x256xbf16>
    %c0_6 = arith.constant 0 : index
    %c0_7 = arith.constant 0 : index
    %10 = vector.load %arg4[%c0_6, %c0_7] : memref<256x128xbf16, #tpu.memory_space<vmem>>, vector<256x128xbf16>
    %cst_8 = arith.constant dense<0.000000e+00> : vector<2x128xf32>
    %11 = tpu.matmul %9, %10, %cst_8 {dimension_numbers = #tpu.dot_dimension_numbers<[1], [0], [0], [1], [0, 0, 1, 1], [], []>} : vector<2x256xbf16>, vector<256x128xbf16>, vector<2x128xf32> -> vector<2x128xf32>
    %c0_9 = arith.constant 0 : index
    %c0_10 = arith.constant 0 : index
    %12 = vector.load %arg5[%c0_9, %c0_10] : memref<1x128xf32, #tpu.memory_space<vmem>>, vector<1x128xf32>
    %13 = vector.broadcast %12 : vector<1x128xf32> to vector<2x128xf32>
    %14 = arith.addf %11, %13 : vector<2x128xf32>
    %cst_11 = arith.constant 0.000000e+00 : f32
    %15 = vector.broadcast %cst_11 : f32 to vector<2x128xf32>
    %16 = arith.maximumf %14, %15 : vector<2x128xf32>
    %17 = arith.truncf %16 : vector<2x128xf32> to vector<2x128xbf16>
    %c0_12 = arith.constant 0 : index
    %c0_13 = arith.constant 0 : index
    %18 = vector.load %arg6[%c0_12, %c0_13] : memref<128x128xbf16, #tpu.memory_space<vmem>>, vector<128x128xbf16>
    %cst_14 = arith.constant dense<0.000000e+00> : vector<2x128xf32>
    %19 = tpu.matmul %17, %18, %cst_14 {dimension_numbers = #tpu.dot_dimension_numbers<[1], [0], [0], [1], [0, 0, 1, 1], [], []>} : vector<2x128xbf16>, vector<128x128xbf16>, vector<2x128xf32> -> vector<2x128xf32>
    %c0_15 = arith.constant 0 : index
    %c0_16 = arith.constant 0 : index
    %20 = vector.load %arg7[%c0_15, %c0_16] : memref<1x128xf32, #tpu.memory_space<vmem>>, vector<1x128xf32>
    %21 = vector.broadcast %20 : vector<1x128xf32> to vector<2x128xf32>
    %22 = arith.addf %19, %21 : vector<2x128xf32>
    %cst_17 = arith.constant 0.000000e+00 : f32
    %23 = vector.broadcast %cst_17 : f32 to vector<2x128xf32>
    %24 = arith.maximumf %22, %23 : vector<2x128xf32>
    %25 = arith.truncf %24 : vector<2x128xf32> to vector<2x128xbf16>
    %c0_18 = arith.constant 0 : index
    %c0_19 = arith.constant 0 : index
    %26 = vector.load %arg8[%c0_18, %c0_19] : memref<128x128xbf16, #tpu.memory_space<vmem>>, vector<128x128xbf16>
    %cst_20 = arith.constant dense<0.000000e+00> : vector<2x128xf32>
    %27 = tpu.matmul %25, %26, %cst_20 {dimension_numbers = #tpu.dot_dimension_numbers<[1], [0], [0], [1], [0, 0, 1, 1], [], []>} : vector<2x128xbf16>, vector<128x128xbf16>, vector<2x128xf32> -> vector<2x128xf32>
    %c0_21 = arith.constant 0 : index
    %c0_22 = arith.constant 0 : index
    %28 = vector.load %arg9[%c0_21, %c0_22] : memref<1x128xf32, #tpu.memory_space<vmem>>, vector<1x128xf32>
    %29 = vector.broadcast %28 : vector<1x128xf32> to vector<2x128xf32>
    %30 = arith.addf %27, %29 : vector<2x128xf32>
    %cst_23 = arith.constant dense<0xFF800000> : vector<2xf32>
    %31 = vector.multi_reduction <maximumf>, %30, %cst_23 [1] : vector<2x128xf32> to vector<2xf32>
    %32 = vector.shape_cast %31 : vector<2xf32> to vector<2x1xf32>
    %33 = vector.broadcast %32 : vector<2x1xf32> to vector<2x128xf32>
    %34 = arith.subf %30, %33 : vector<2x128xf32>
    %35 = math.exp %34 : vector<2x128xf32>
    %cst_24 = arith.constant dense<0.000000e+00> : vector<2xf32>
    %36 = vector.multi_reduction <add>, %35, %cst_24 [1] : vector<2x128xf32> to vector<2xf32>
    %37 = vector.shape_cast %36 : vector<2xf32> to vector<2x1xf32>
    %38 = math.log %37 : vector<2x1xf32>
    %39 = vector.broadcast %38 : vector<2x1xf32> to vector<2x128xf32>
    %40 = arith.subf %34, %39 : vector<2x128xf32>
    %41 = arith.truncf %40 : vector<2x128xf32> to vector<2x128xbf16>
    %c0_25 = arith.constant 0 : index
    %c0_26 = arith.constant 0 : index
    %42 = vector.load %arg10[%c0_25, %c0_26] : memref<2x128xbf16, #tpu.memory_space<vmem>>, vector<2x128xbf16>
    tpu.vector_store %arg10[%c0_25, %c0_26], %41 {strides = array<i32>} : memref<2x128xbf16, #tpu.memory_space<vmem>>, vector<2x128xbf16>,
    return
  }
  func.func @transform_0(%arg0: i32) -> (i32, i32) {
    %c0_i32 = arith.constant 0 : i32
    %c0_i32_0 = arith.constant 0 : i32
    return %arg0, %c0_i32 : i32, i32
  }
  func.func @transform_1(%arg0: i32) -> (i32, i32) {
    %c0_i32 = arith.constant 0 : i32
    %c0_i32_0 = arith.constant 0 : i32
    %c0_i32_1 = arith.constant 0 : i32
    return %c0_i32, %c0_i32_0 : i32, i32
  }
  func.func @transform_2(%arg0: i32) -> (i32, i32) {
    %c0_i32 = arith.constant 0 : i32
    %c0_i32_0 = arith.constant 0 : i32
    %c0_i32_1 = arith.constant 0 : i32
    return %c0_i32, %c0_i32_0 : i32, i32
  }
  func.func @transform_3(%arg0: i32) -> (i32, i32) {
    %c0_i32 = arith.constant 0 : i32
    %c0_i32_0 = arith.constant 0 : i32
    %c0_i32_1 = arith.constant 0 : i32
    return %c0_i32, %c0_i32_0 : i32, i32
  }
  func.func @transform_4(%arg0: i32) -> (i32, i32) {
    %c0_i32 = arith.constant 0 : i32
    %c0_i32_0 = arith.constant 0 : i32
    %c0_i32_1 = arith.constant 0 : i32
    return %c0_i32, %c0_i32_0 : i32, i32
  }
  func.func @transform_5(%arg0: i32) -> (i32, i32) {
    %c0_i32 = arith.constant 0 : i32
    %c0_i32_0 = arith.constant 0 : i32
    %c0_i32_1 = arith.constant 0 : i32
    return %c0_i32, %c0_i32_0 : i32, i32
  }
  func.func @transform_6(%arg0: i32) -> (i32, i32) {
    %c0_i32 = arith.constant 0 : i32
    %c0_i32_0 = arith.constant 0 : i32
    %c0_i32_1 = arith.constant 0 : i32
    return %c0_i32, %c0_i32_0 : i32, i32
  }
  func.func @transform_7(%arg0: i32) -> (i32, i32) {
    %c0_i32 = arith.constant 0 : i32
    %c0_i32_0 = arith.constant 0 : i32
    %c0_i32_1 = arith.constant 0 : i32
    return %c0_i32, %c0_i32_0 : i32, i32
  }
  func.func @transform_8(%arg0: i32) -> (i32, i32) {
    %c0_i32 = arith.constant 0 : i32
    %c0_i32_0 = arith.constant 0 : i32
    %c0_i32_1 = arith.constant 0 : i32
    return %c0_i32, %c0_i32_0 : i32, i32
  }
  func.func @transform_9(%arg0: i32) -> (i32, i32) {
    %c0_i32 = arith.constant 0 : i32
    %c0_i32_0 = arith.constant 0 : i32
    return %arg0, %c0_i32 : i32, i32
  }
}

</mosaic_0001>

<bundles_post_ra>
// kernel: classifier_forward.1
= control target key start
LH: loop header
LB: loop body
LE: loop exit
PB: predicated region body
PF: predicated region fallthrough
CT: control target
= control target key end

     0   :  { %14 = vsyncpa [#allocation3], 0  ;;  %s2049_s0 = inlined_call_operand.vmem [shape: f32[2,784], index: 0, kind: input, shape index: {}]   ;;  %s2050_s1 = inlined_call_operand.hbm [shape: bf16[784,256], index: 1, kind: input, shape index: {}]   ;;  %s2051_s2 = inlined_call_operand.vmem [shape: f32[1,256], index: 2, kind: input, shape index: {}]   ;;  %s2052_s3 = inlined_call_operand.vmem [shape: bf16[256,128], index: 3, kind: input, shape index: {}]   ;;  %s2053_s4 = inlined_call_operand.vmem [shape: f32[1,128], index: 4, kind: input, shape index: {}]   ;;  %s2054_s5 = inlined_call_operand.vmem [shape: bf16[128,128], index: 5, kind: input, shape index: {}]   ;;  %s2055_s6 = inlined_call_operand.vmem [shape: f32[1,128], index: 6, kind: input, shape index: {}]   ;;  %s2056_s7 = inlined_call_operand.hbm [shape: bf16[128,128], index: 7, kind: input, shape index: {}]   ;;  %s2057_s8 = inlined_call_operand.vmem [shape: f32[1,128], index: 8, kind: input, shape index: {}]   ;;  %s2058_s9 = inlined_call_operand.hbm [shape: bf16[2,128], index: 9, kind: output, shape index: {}]  }
   0x1   :  { %15 = vsyncpa [#allocation6], 0 }
   0x2   :  { %16 = vsyncpa [#allocation4], 0  ;;  %s1811_s30 = smov [#allocation2]   ;;  %s1739_s13 = scalar_lea.hbm %s2050_s1, 12544 }
   0x3   :  { %s24_s10 = sshll.u32 %s1811_s30, 4  ;;  %p1740_p0 = scmp.ne.s32.totalorder %s2050_s1, %s1739_s13  ;;  %s25_s10 = int_to_ptr.vmem [resolvable:$true] %s24_s10 }
   0x4   :  { %p1743_p1 = scmp.lt.u32.totalorder %s1739_s13, %s2050_s1 }
   0x6   :  { %p1745_p2 = pnand %p1743_p1, %p1740_p0 }
   0x8   :  { %1748 = shalt.err (!%p1745_p2)
}
   0x9   :  { %s1749_s18 = scalar_lea.vmem %s25_s10, 12544  ;;  %p1754_p4 = scmp.lt.s32.totalorder %s25_s10, %s25_s10 }
   0xa   :  { %p1750_p3 = scmp.ne.s32.totalorder %s25_s10, %s1749_s18  ;;  %p1755_p5 = scmp.lt.s32.totalorder %s1749_s18, %s1749_s18 }
   0xc   :  { %p1756_p6 = por %p1755_p5, %p1754_p4 }
   0xe   :  { %p1757_p7 = pnand %p1756_p6, %p1750_p3 }
  0x10   :  { %1760 = shalt.err (!%p1757_p7)
}
  0x11   :  { %s1812_s19 = smov 128   ;;  %s1813_s20 = smov 8  }
  0x12   :  { %30 = dma.hbm_to_vmem [thread:$0]  %s2050_s1, 12544, %s25_s10, [#allocation3], %s1812_s19, %s1812_s19, %s1813_s20  }
  0x13   :  { %s1814_s23 = smov [#allocation5]   ;;  %s1761_s27 = scalar_lea.hbm %s2056_s7, 1024 }
  0x14   :  { %s46_s24 = sshll.u32 %s1814_s23, 4  ;;  %p1762_p8 = scmp.ne.s32.totalorder %s2056_s7, %s1761_s27  ;;  %s47_s24 = int_to_ptr.vmem [resolvable:$true] %s46_s24 }
  0x15   :  { %p1765_p9 = scmp.lt.u32.totalorder %s1761_s27, %s2056_s7 }
  0x17   :  { %p1767_p10 = pnand %p1765_p9, %p1762_p8 }
  0x19   :  { %1770 = shalt.err (!%p1767_p10)
}
  0x1a   :  { %s1771_s12 = scalar_lea.vmem %s47_s24, 1024  ;;  %p1776_p12 = scmp.lt.s32.totalorder %s47_s24, %s47_s24 }
  0x1b   :  { %p1772_p11 = scmp.ne.s32.totalorder %s47_s24, %s1771_s12  ;;  %p1777_p13 = scmp.lt.s32.totalorder %s1771_s12, %s1771_s12 }
  0x1d   :  { %p1778_p0 = por %p1777_p13, %p1776_p12 }
  0x1f   :  { %p1779_p1 = pnand %p1778_p0, %p1772_p11 }
  0x21   :  { %1782 = shalt.err (!%p1779_p1)
}
  0x22   :  { %s1815_s1 = smov 64   ;;  %s1816_s10 = smov 4  }
  0x23   :  { %52 = dma.hbm_to_vmem [thread:$0]  %s2056_s7, 1024, %s47_s24, [#allocation6], %s1815_s1, %s1815_s1, %s1816_s10  }
  0x24   :  { %1805 = dma.done.wait [#allocation3], 12544  }
  0x25   :  { %1806 = vsyncadd [#allocation3], 4294954752 }
  0x26   :  { %1807 = dma.done.wait [#allocation6], 1024  }
  0x27   :  { %1808 = vsyncadd [#allocation6], 4294966272  ;;  %v1554_v0 = vld [vmem:[#allocation2 + $0x104] ss:$8 sps:$4 sm:$0xff]   ;;  %v1556_v1 = vld [vmem:[#allocation2 + $0x100] ss:$8 sps:$4 sm:$0xff]   ;;  %v70_v11 = vlaneseq }
  0x28   :  { %758 = vmatprep.subr.bf16.mxu0 %v1554_v0  ;;  %v1557_v2 = vld [vmem:[#allocation2 + $0x114] ss:$8 sps:$4 sm:$0xff]   ;;  %v1559_v3 = vld [vmem:[#allocation2 + $0x110] ss:$8 sps:$4 sm:$0xff]   ;;  %v1560_v4 = vld [vmem:[#allocation2 + $0x124] ss:$8 sps:$4 sm:$0xff]  }
  0x29   :  { %759 = vmatpush1.bf16.msra.mxu0 %v1556_v1  ;;  %v1562_v5 = vld [vmem:[#allocation2 + $0x120] ss:$8 sps:$4 sm:$0xff]   ;;  %v1563_v6 = vld [vmem:[#allocation2 + $0x134] ss:$8 sps:$4 sm:$0xff]   ;;  %v1565_v7 = vld [vmem:[#allocation2 + $0x130] ss:$8 sps:$4 sm:$0xff]  }
  0x2a   :  { %760 = vmatprep.subr.bf16.mxu0 %v1557_v2  ;;  %v1566_v8 = vld [vmem:[#allocation2 + $0x144] ss:$8 sps:$4 sm:$0xff]   ;;  %v1817_v9 = vmov 1983009808   ;;  %v1568_v12 = vld [vmem:[#allocation2 + $0x140] ss:$8 sps:$4 sm:$0xff]  }
  0x2b   :  { %v68_v10 = vunpack.c.l.s4 %v1817_v9  ;;  %v1569_v13 = vld [vmem:[#allocation2 + $0x154] ss:$8 sps:$4 sm:$0xff]   ;;  %v1896_v15 = vshrl.u32 %v70_v11, 7  ;;  %v1571_v16 = vld [vmem:[#allocation2 + $0x150] ss:$8 sps:$4 sm:$0xff]   ;;  %v62_v19 = vld [vmem:[%s2049_s0] sm:$0xff] }
  0x2c   :  { %v1572_v17 = vld [vmem:[#allocation2 + $0x164] ss:$8 sps:$4 sm:$0xff]   ;;  %v66_v20 = vcombine.high %v62_v19, %v62_v19  ;;  %v1574_v22 = vld [vmem:[#allocation2 + $0x160] ss:$8 sps:$4 sm:$0xff]   ;;  %v1575_v23 = vld [vmem:[#allocation2 + $0x174] ss:$8 sps:$4 sm:$0xff]  }
  0x2d   :  { %761 = vmatpush1.bf16.msra.mxu0 %v1559_v3  ;;  %v69_v14 = vunpack.c.0.s8 %v68_v10  ;;  %v1609_v26 = vld [vmem:[#allocation2 + $0x4] ss:$8 sps:$4 sm:$0xff]   ;;  %v1577_v27 = vld [vmem:[#allocation2 + $0x170] ss:$8 sps:$4 sm:$0xff]   ;;  %v1614_v29 = vld [vmem:[#allocation2] ss:$8 sps:$4 sm:$0xff]  }
  0x2e   :  { %762 = vmatprep.subr.bf16.mxu0 %v1560_v4  ;;  %717 = vmatprep.subr.bf16.mxu1 %v1609_v26  ;;  %v1615_v31 = vld [vmem:[#allocation2 + $0x14] ss:$8 sps:$4 sm:$0xff]   ;;  %v1578_v32 = vld [vmem:[#allocation2 + $0x184] ss:$8 sps:$4 sm:$0xff]   ;;  %v1620_v34 = vld [vmem:[#allocation2 + $0x10] ss:$8 sps:$4 sm:$0xff]  }
  0x2f   :  { %v1899_v18 = vsub.s32 %v69_v14, %v1896_v15  ;;  %718 = vmatpush1.bf16.msra.mxu1 %v1614_v29  ;;  %v1621_v35 = vld [vmem:[#allocation2 + $0x24] ss:$8 sps:$4 sm:$0xff]   ;;  %v1580_v36 = vld [vmem:[#allocation2 + $0x180] ss:$8 sps:$4 sm:$0xff]   ;;  %v1581_v37 = vld [vmem:[#allocation2 + $0x194] ss:$8 sps:$4 sm:$0xff]  }
  0x30   :  { %719 = vmatprep.subr.bf16.mxu1 %v1615_v31  ;;  %v1626_v38 = vld [vmem:[#allocation2 + $0x20] ss:$8 sps:$4 sm:$0xff]   ;;  %v1627_v39 = vld [vmem:[#allocation2 + $0x34] ss:$8 sps:$4 sm:$0xff]   ;;  %v1583_v40 = vld [vmem:[#allocation2 + $0x190] ss:$8 sps:$4 sm:$0xff]  }
  0x31   :  { %763 = vmatpush1.bf16.msra.mxu0 %v1562_v5  ;;  %v1905_v21 = vrot.slane %v62_v19, %v1899_v18  ;;  %v1908_v24 = vrot.slane %v66_v20, %v1899_v18  ;;  %v1584_v41 = vld [vmem:[#allocation2 + $0x1a4] ss:$8 sps:$4 sm:$0xff]   ;;  %v1632_v42 = vld [vmem:[#allocation2 + $0x30] ss:$8 sps:$4 sm:$0xff]   ;;  %v1586_v44 = vld [vmem:[#allocation2 + $0x1a0] ss:$8 sps:$4 sm:$0xff]  }
  0x32   :  { %764 = vmatprep.subr.bf16.mxu0 %v1563_v6  ;;  %v1633_v43 = vld [vmem:[#allocation2 + $0x44] ss:$8 sps:$4 sm:$0xff]   ;;  %v1587_v45 = vld [vmem:[#allocation2 + $0x1b4] ss:$8 sps:$4 sm:$0xff]   ;;  %v1638_v46 = vld [vmem:[#allocation2 + $0x40] ss:$8 sps:$4 sm:$0xff]  }
  0x33   :  { %v81_v25 = vcombine.high %v1905_v21, %v1905_v21  ;;  %v82_v28 = vcombine.high %v1908_v24, %v1908_v24  ;;  %720 = vmatpush1.bf16.msra.mxu1 %v1620_v34  ;;  %v1639_v47 = vld [vmem:[#allocation2 + $0x54] ss:$8 sps:$4 sm:$0xff]   ;;  %v1589_v48 = vld [vmem:[#allocation2 + $0x1b0] ss:$8 sps:$4 sm:$0xff]   ;;  %v1590_v49 = vld [vmem:[#allocation2 + $0x1c4] ss:$8 sps:$4 sm:$0xff]   ;;  %v108_v5 = vpack.c.bf16 %v1908_v24, %v1908_v24 }
  0x34   :  { %721 = vmatprep.subr.bf16.mxu1 %v1621_v35  ;;  %v1644_v50 = vld [vmem:[#allocation2 + $0x50] ss:$8 sps:$4 sm:$0xff]   ;;  %v1645_v51 = vld [vmem:[#allocation2 + $0x64] ss:$8 sps:$4 sm:$0xff]   ;;  %v1592_v52 = vld [vmem:[#allocation2 + $0x1c0] ss:$8 sps:$4 sm:$0xff]  }
  0x35   :  { %765 = vmatpush1.bf16.msra.mxu0 %v1565_v7  ;;  %v107_v30 = vpack.c.bf16 %v81_v25, %v81_v25  ;;  %v109_v33 = vpack.c.bf16 %v82_v28, %v82_v28  ;;  %v1593_v53 = vld [vmem:[#allocation2 + $0x1d4] ss:$8 sps:$4 sm:$0xff]   ;;  %v1650_v54 = vld [vmem:[#allocation2 + $0x60] ss:$8 sps:$4 sm:$0xff]   ;;  %v1595_v56 = vld [vmem:[#allocation2 + $0x1d0] ss:$8 sps:$4 sm:$0xff]  }
  0x36   :  { %766 = vmatprep.subr.bf16.mxu0 %v1566_v8  ;;  %v1651_v55 = vld [vmem:[#allocation2 + $0x74] ss:$8 sps:$4 sm:$0xff]   ;;  %v1596_v57 = vld [vmem:[#allocation2 + $0x1e4] ss:$8 sps:$4 sm:$0xff]   ;;  %v1656_v58 = vld [vmem:[#allocation2 + $0x70] ss:$8 sps:$4 sm:$0xff]  }
  0x37   :  { %749 = vmatprep.mubr.bf16.mxu1 %v107_v30  ;;  %790 = vmatprep.mubr.bf16.mxu0 %v109_v33  ;;  %v1657_v59 = vld [vmem:[#allocation2 + $0x84] ss:$8 sps:$4 sm:$0xff]   ;;  %v1598_v60 = vld [vmem:[#allocation2 + $0x1e0] ss:$8 sps:$4 sm:$0xff]   ;;  %v1599_v61 = vld [vmem:[#allocation2 + $0x1f4] ss:$8 sps:$4 sm:$0xff]  }
  0x38   :  { %722 = vmatpush1.bf16.msra.mxu1 %v1626_v38  ;;  %v1662_v62 = vld [vmem:[#allocation2 + $0x80] ss:$8 sps:$4 sm:$0xff]   ;;  %v1663_v63 = vld [vmem:[#allocation2 + $0x94] ss:$8 sps:$4 sm:$0xff]   ;;  %v1601_v0 = vld [vmem:[#allocation2 + $0x1f0] ss:$8 sps:$4 sm:$0xff]  }
  0x39   :  { %767 = vmatpush1.bf16.msra.mxu0 %v1568_v12  ;;  %723 = vmatprep.subr.bf16.mxu1 %v1627_v39  ;;  %v1605_v1 = vld [vmem:[#allocation2 + $0x204] ss:$8 sps:$4 sm:$0xff]   ;;  %v1668_v2 = vld [vmem:[#allocation2 + $0x90] ss:$8 sps:$4 sm:$0xff]   ;;  %v1603_v8 = vld [vmem:[#allocation2 + $0x200] ss:$8 sps:$4 sm:$0xff]  }
  0x3a   :  { %768 = vmatprep.subr.bf16.mxu0 %v1569_v13  ;;  %v1669_v3 = vld [vmem:[#allocation2 + $0xa4] ss:$8 sps:$4 sm:$0xff]   ;;  %v1608_v9 = vld [vmem:[#allocation2 + $0x214] ss:$8 sps:$4 sm:$0xff]   ;;  %v1674_v10 = vld [vmem:[#allocation2 + $0xa0] ss:$8 sps:$4 sm:$0xff]  }
  0x3b   :  { %v63_v4 = vld [vmem:[%s2049_s0 + $0x8] sm:$0x3f]  ;;  %v1675_v13 = vld [vmem:[#allocation2 + $0xb4] ss:$8 sps:$4 sm:$0xff]   ;;  %v1606_v14 = vld [vmem:[#allocation2 + $0x210] ss:$8 sps:$4 sm:$0xff]  }
  0x3c   :  { %724 = vmatpush1.bf16.msra.mxu1 %v1632_v42  ;;  %v83_v6 = vcombine.high %v63_v4, %v63_v4  ;;  %v1920_v7 = vrot.slane %v63_v4, %v1899_v18  ;;  %v1680_v19 = vld [vmem:[#allocation2 + $0xb0] ss:$8 sps:$4 sm:$0xff]   ;;  %v1681_v20 = vld [vmem:[#allocation2 + $0xc4] ss:$8 sps:$4 sm:$0xff]   ;;  %v1687_v25 = vld [vmem:[#allocation2 + $0xd4] ss:$8 sps:$4 sm:$0xff]  }
  0x3d   :  { %769 = vmatpush1.bf16.msra.mxu0 %v1571_v16  ;;  %725 = vmatprep.subr.bf16.mxu1 %v1633_v43  ;;  %v1617_v24 = vld [vmem:[#allocation2 + $0x230] ss:$8 sps:$4 sm:$0xff]   ;;  %v1625_v26 = vld [vmem:[#allocation2 + $0x244] ss:$8 sps:$4 sm:$0xff]   ;;  %v1623_v29 = vld [vmem:[#allocation2 + $0x240] ss:$8 sps:$4 sm:$0xff]  }
  0x3e   :  { %770 = vmatprep.subr.bf16.mxu0 %v1572_v17  ;;  %v1923_v11 = vrot.slane %v83_v6, %v1899_v18  ;;  %v98_v12 = vcombine.high %v1920_v7, %v1920_v7  ;;  %v1613_v17 = vld [vmem:[#allocation2 + $0x224] ss:$8 sps:$4 sm:$0xff]   ;;  %v1619_v18 = vld [vmem:[#allocation2 + $0x234] ss:$8 sps:$4 sm:$0xff]   ;;  %v1699_v31 = vld [vmem:[#allocation2 + $0xe0] ss:$8 sps:$4 sm:$0xff]  }
  0x3f   :  { %v1694_v28 = vld [vmem:[#allocation2 + $0xe4] ss:$8 sps:$4 sm:$0xff]   ;;  %v1631_v30 = vld [vmem:[#allocation2 + $0x254] ss:$8 sps:$4 sm:$0xff]   ;;  %v1629_v33 = vld [vmem:[#allocation2 + $0x250] ss:$8 sps:$4 sm:$0xff]  }
  0x40   :  { %726 = vmatpush1.bf16.msra.mxu1 %v1638_v46  ;;  %v111_v16 = vpack.c.bf16 %v98_v12, %v98_v12  ;;  %v1637_v34 = vld [vmem:[#allocation2 + $0x264] ss:$8 sps:$4 sm:$0xff]   ;;  %v1702_v35 = vld [vmem:[#allocation2 + $0xf0] ss:$8 sps:$4 sm:$0xff]   ;;  %v1643_v38 = vld [vmem:[#allocation2 + $0x274] ss:$8 sps:$4 sm:$0xff]  }
  0x41   :  { %771 = vmatpush1.bf16.msra.mxu0 %v1574_v22  ;;  %727 = vmatprep.subr.bf16.mxu1 %v1639_v47  ;;  %v1611_v22 = vld [vmem:[#allocation2 + $0x220] ss:$8 sps:$4 sm:$0xff]   ;;  %v1641_v42 = vld [vmem:[#allocation2 + $0x270] ss:$8 sps:$4 sm:$0xff]   ;;  %v1649_v43 = vld [vmem:[#allocation2 + $0x284] ss:$8 sps:$4 sm:$0xff]  }
  0x42   :  { %772 = vmatprep.subr.bf16.mxu0 %v1575_v23  ;;  %v1686_v23 = vld [vmem:[#allocation2 + $0xc0] ss:$8 sps:$4 sm:$0xff]   ;;  %v1655_v46 = vld [vmem:[#allocation2 + $0x294] ss:$8 sps:$4 sm:$0xff]   ;;  %v1818_v4 = vmov 0   ;;  %vm713_vm0 = vcmask 130048  }
  0x43   :  { %v1704_v39 = vld [vmem:[%s2052_s3] sm:$0xff]   ;;  %v1708_v47 = vld [vmem:[%s2052_s3 + $0x10] sm:$0xff]   ;;  %v1713_v6 = vld [vmem:[%s2052_s3 + $0x68] sm:$0xff]   ;;  %v1819_v12 = vmov 0.0   ;;  %vm1820_vm1 = vmmov 0   ;;  %vm1286_vm2 = vcmask 1041408  }
  0x44   :  { %728 = vmatpush1.bf16.msra.mxu1 %v1644_v50  ;;  %v1661_v50 = vld [vmem:[#allocation2 + $0x2a4] ss:$8 sps:$4 sm:$0xff]  }
  0x45   :  { %773 = vmatpush1.bf16.msra.mxu0 %v1577_v27  ;;  %729 = vmatprep.subr.bf16.mxu1 %v1645_v51  ;;  %v1692_v27 = vld [vmem:[#allocation2 + $0xd0] ss:$8 sps:$4 sm:$0xff]  }
  0x46   :  { %774 = vmatprep.subr.bf16.mxu0 %v1578_v32  ;;  %v1700_v32 = vld [vmem:[#allocation2 + $0xf4] ss:$8 sps:$4 sm:$0xff]  }
  0x47   :  { %v1710_v51 = vld [vmem:[%s2052_s3 + $0x18] sm:$0xff]  }
  0x48   :  { %730 = vmatpush1.bf16.msra.mxu1 %v1650_v54  ;;  %v1667_v54 = vld [vmem:[#allocation2 + $0x2b4] ss:$8 sps:$4 sm:$0xff]  }
  0x49   :  { %775 = vmatpush1.bf16.msra.mxu0 %v1580_v36  ;;  %731 = vmatprep.subr.bf16.mxu1 %v1651_v55  ;;  %v1703_v36 = vld [vmem:[%s2052_s3 + $0x40] sm:$0xff]  }
  0x4a   :  { %776 = vmatprep.subr.bf16.mxu0 %v1581_v37  ;;  %v1635_v37 = vld [vmem:[#allocation2 + $0x260] ss:$8 sps:$4 sm:$0xff]  }
  0x4b   :  { %v1712_v55 = vld [vmem:[%s2052_s3 + $0x20] sm:$0xff]  }
  0x4c   :  { %732 = vmatpush1.bf16.msra.mxu1 %v1656_v58  ;;  %v1671_v58 = vld [vmem:[#allocation2 + $0x2c0] ss:$8 sps:$4 sm:$0xff]  }
  0x4d   :  { %777 = vmatpush1.bf16.msra.mxu0 %v1583_v40  ;;  %733 = vmatprep.subr.bf16.mxu1 %v1657_v59  ;;  %v106_v40 = vpack.c.bf16 %v1905_v21, %v1905_v21  ;;  %v1707_v21 = vld [vmem:[%s2052_s3 + $0x50] sm:$0xff]  }
  0x4e   :  { %778 = vmatprep.subr.bf16.mxu0 %v1584_v41  ;;  %v1705_v41 = vld [vmem:[%s2052_s3 + $0x48] sm:$0xff]   ;;  %v1679_v59 = vld [vmem:[#allocation2 + $0x2d4] ss:$8 sps:$4 sm:$0xff]  }
  0x50   :  { %734 = vmatpush1.bf16.msra.mxu1 %v1662_v62  ;;  %v1683_v62 = vld [vmem:[#allocation2 + $0x2e0] ss:$8 sps:$4 sm:$0xff]  }
  0x51   :  { %779 = vmatpush1.bf16.msra.mxu0 %v1586_v44  ;;  %735 = vmatprep.subr.bf16.mxu1 %v1663_v63  ;;  %v1706_v44 = vld [vmem:[%s2052_s3 + $0x8] sm:$0xff]   ;;  %v1691_v63 = vld [vmem:[#allocation2 + $0x2f4] ss:$8 sps:$4 sm:$0xff]  }
  0x52   :  { %780 = vmatprep.subr.bf16.mxu0 %v1587_v45  ;;  %v1647_v45 = vld [vmem:[#allocation2 + $0x280] ss:$8 sps:$4 sm:$0xff]  }
  0x54   :  { %736 = vmatpush1.bf16.msra.mxu1 %v1668_v2  ;;  %v110_v2 = vpack.c.bf16 %v1920_v7, %v1920_v7  ;;  %v1714_v7 = vld [vmem:[%s2052_s3 + $0x28] sm:$0xff]  }
  0x55   :  { %781 = vmatpush1.bf16.msra.mxu0 %v1589_v48  ;;  %737 = vmatprep.subr.bf16.mxu1 %v1669_v3  ;;  %v1709_v48 = vld [vmem:[%s2052_s3 + $0x58] sm:$0xff]   ;;  %v1696_v3 = vld [vmem:[#allocation2 + $0x300] ss:$8 sps:$4 sm:$0xff]  }
  0x56   :  { %782 = vmatprep.subr.bf16.mxu0 %v1590_v49  ;;  %v1653_v49 = vld [vmem:[#allocation2 + $0x290] ss:$8 sps:$4 sm:$0xff]  }
  0x58   :  { %738 = vmatpush1.bf16.msra.mxu1 %v1674_v10  ;;  %v1717_v10 = vld [vmem:[%s2052_s3 + $0x78] sm:$0xff]  }
  0x59   :  { %783 = vmatpush1.bf16.msra.mxu0 %v1592_v52  ;;  %739 = vmatprep.subr.bf16.mxu1 %v1675_v13  ;;  %v1711_v52 = vld [vmem:[%s2052_s3 + $0x60] sm:$0xff]  }
  0x5a   :  { %784 = vmatprep.subr.bf16.mxu0 %v1593_v53  ;;  %v1659_v53 = vld [vmem:[#allocation2 + $0x2a0] ss:$8 sps:$4 sm:$0xff]  }
  0x5c   :  { %740 = vmatpush1.bf16.msra.mxu1 %v1680_v19  ;;  %v215_v19 = vsub.s32 0, %v1896_v15 }
  0x5d   :  { %785 = vmatpush1.bf16.msra.mxu0 %v1595_v56  ;;  %741 = vmatprep.subr.bf16.mxu1 %v1681_v20  ;;  %v1665_v56 = vld [vmem:[#allocation2 + $0x2b0] ss:$8 sps:$4 sm:$0xff]   ;;  %v211_v20 = vld [vmem:[%s2051_s2] sm:$0x3] }
  0x5e   :  { %786 = vmatprep.subr.bf16.mxu0 %v1596_v57  ;;  %v1673_v57 = vld [vmem:[#allocation2 + $0x2c4] ss:$8 sps:$4 sm:$0xff]  }
  0x60   :  { %742 = vmatpush1.bf16.msra.mxu1 %v1686_v23 }
  0x61   :  { %787 = vmatpush1.bf16.msra.mxu0 %v1598_v60  ;;  %743 = vmatprep.subr.bf16.mxu1 %v1687_v25  ;;  %v1677_v60 = vld [vmem:[#allocation2 + $0x2d0] ss:$8 sps:$4 sm:$0xff]  }
  0x62   :  { %788 = vmatprep.subr.bf16.mxu0 %v1599_v61  ;;  %v1685_v61 = vld [vmem:[#allocation2 + $0x2e4] ss:$8 sps:$4 sm:$0xff]  }
  0x64   :  { %744 = vmatpush1.bf16.msra.mxu1 %v1692_v27 }
  0x65   :  { %789 = vmatpush1.bf16.msra.mxu0 %v1601_v0  ;;  %745 = vmatprep.subr.bf16.mxu1 %v1694_v28  ;;  %v1689_v0 = vld [vmem:[#allocation2 + $0x2f0] ss:$8 sps:$4 sm:$0xff]  }
  0x66   :  { %799 = vmatprep.subr.bf16.mxu0 %v1605_v1  ;;  %v1698_v1 = vld [vmem:[#allocation2 + $0x304] ss:$8 sps:$4 sm:$0xff]  }
  0x68   :  { %791 = vmatmul.mubr.bf16.vlgmr.msra.gmra.mrb[0].mxu0 %v108_v5  ;;  %746 = vmatpush1.bf16.msra.mxu1 %v1699_v31  ;;  %v112_v5 = vpack.c.bf16 %v1923_v11, %v1923_v11  ;;  %v1718_v11 = vld [vmem:[%s2052_s3 + $0x38] sm:$0xff]  }
  0x69   :  { %800 = vmatpush1.bf16.msra.mxu0 %v1603_v8  ;;  %831 = vmatprep.mubr.bf16.mxu0 %v111_v16  ;;  %v1715_v8 = vld [vmem:[%s2052_s3 + $0x70] sm:$0xff]  }
  0x6a   :  { %801 = vmatprep.subr.bf16.mxu0 %v1608_v9  ;;  %747 = vmatprep.subr.bf16.mxu1 %v1700_v32  ;;  %v1716_v9 = vld [vmem:[%s2052_s3 + $0x30] sm:$0xff]  }
  0x6c   :  { %748 = vmatpush1.bf16.msra.mxu1 %v1702_v35  ;;  %v1719_v35 = vld [vmem:[%s2054_s5] sm:$0xff]  }
  0x6d   :  { %802 = vmatpush1.bf16.msra.mxu0 %v1606_v14  ;;  %1451 = vmatprep.subr.bf16.mxu1 %v1703_v36 }
  0x6e   :  { %803 = vmatprep.subr.bf16.mxu0 %v1613_v17 }
  0x6f   :  { %750 = vmatmul.mubr.bf16.vlgmr.msra.gmra.mrb[0].mxu1 %v106_v40  ;;  %v1724_v40 = vld [vmem:[%s2054_s5 + $0x28] sm:$0xff]  }
  0x70   :  { %1452 = vmatpush3.bf16.msra.mxu1 %v1704_v39  ;;  %v1723_v39 = vld [vmem:[%s2054_s5 + $0x20] sm:$0xff]  }
  0x71   :  { %804 = vmatpush1.bf16.msra.mxu0 %v1611_v22  ;;  %1453 = vmatprep.subr.bf16.mxu1 %v1705_v41  ;;  %v219_v22 = vsub.s32 1, %v1896_v15  ;;  %v1720_v15 = vld [vmem:[%s2054_s5 + $0x8] sm:$0xff]   ;;  %v1725_v41 = vld [vmem:[%s2054_s5 + $0x30] sm:$0xff]  }
  0x72   :  { %805 = vmatprep.subr.bf16.mxu0 %v1619_v18  ;;  %v216_v18 = vrot.slane %v211_v20, %v215_v19 }
  0x73   :  { %v220_v23 = vrot.slane %v211_v20, %v219_v22 }
  0x74   :  { %1454 = vmatpush3.bf16.msra.mxu1 %v1706_v44  ;;  %v1416_v44 = vld [vmem:[%s2053_s4] ss:$0 sm:$0xff] }
  0x75   :  { %806 = vmatpush1.bf16.msra.mxu0 %v1617_v24  ;;  %1455 = vmatprep.subr.bf16.mxu1 %v1707_v21 }
  0x76   :  { %807 = vmatprep.subr.bf16.mxu0 %v1625_v26 }
  0x78   :  { %1456 = vmatpush3.bf16.msra.mxu1 %v1708_v47 }
  0x79   :  { %808 = vmatpush1.bf16.msra.mxu0 %v1623_v29  ;;  %1457 = vmatprep.subr.bf16.mxu1 %v1709_v48 }
  0x7a   :  { %809 = vmatprep.subr.bf16.mxu0 %v1631_v30 }
  0x7c   :  { %1458 = vmatpush3.bf16.msra.mxu1 %v1710_v51 }
  0x7d   :  { %810 = vmatpush1.bf16.msra.mxu0 %v1629_v33  ;;  %1459 = vmatprep.subr.bf16.mxu1 %v1711_v52  ;;  %v1728_v52 = vld [vmem:[#allocation5 + $0x8] sm:$0xff]  }
  0x7e   :  { %811 = vmatprep.subr.bf16.mxu0 %v1637_v34 }
  0x80   :  { %1460 = vmatpush3.bf16.msra.mxu1 %v1712_v55  ;;  %v1731_v55 = vld [vmem:[#allocation5 + $0x20] sm:$0xff]  }
  0x81   :  { %812 = vmatpush1.bf16.msra.mxu0 %v1635_v37  ;;  %1461 = vmatprep.subr.bf16.mxu1 %v1713_v6  ;;  %v1721_v37 = vld [vmem:[%s2054_s5 + $0x10] sm:$0xff]  }
  0x82   :  { %813 = vmatprep.subr.bf16.mxu0 %v1643_v38  ;;  %v1722_v38 = vld [vmem:[%s2054_s5 + $0x18] sm:$0xff]  }
  0x84   :  { %1462 = vmatpush3.bf16.msra.mxu1 %v1714_v7 }
  0x85   :  { %814 = vmatpush1.bf16.msra.mxu0 %v1641_v42  ;;  %1463 = vmatprep.subr.bf16.mxu1 %v1715_v8  ;;  %v1726_v42 = vld [vmem:[%s2054_s5 + $0x38] sm:$0xff]  }
  0x86   :  { %815 = vmatprep.subr.bf16.mxu0 %v1649_v43 }
  0x88   :  { %1464 = vmatpush3.bf16.msra.mxu1 %v1716_v9 }
  0x89   :  { %816 = vmatpush1.bf16.msra.mxu0 %v1647_v45  ;;  %1465 = vmatprep.subr.bf16.mxu1 %v1717_v10 }
  0x8a   :  { %817 = vmatprep.subr.bf16.mxu0 %v1655_v46 }
  0x8c   :  { %1466 = vmatpush3.bf16.msra.mxu1 %v1718_v11 }
  0x8d   :  { %818 = vmatpush1.bf16.msra.mxu0 %v1653_v49  ;;  %1491 = vmatprep.subr.bf16.mxu1 %v1819_v12 }
  0x8e   :  { %819 = vmatprep.subr.bf16.mxu0 %v1661_v50  ;;  %v1727_v50 = vld [vmem:[#allocation5] sm:$0xff]  }
  0x91   :  { %820 = vmatpush1.bf16.msra.mxu0 %v1659_v53  ;;  %v1729_v53 = vld [vmem:[#allocation5 + $0x10] sm:$0xff]  }
  0x92   :  { %821 = vmatprep.subr.bf16.mxu0 %v1667_v54  ;;  %v1730_v54 = vld [vmem:[#allocation5 + $0x18] sm:$0xff]  }
  0x95   :  { %822 = vmatpush1.bf16.msra.mxu0 %v1665_v56  ;;  %v1732_v56 = vld [vmem:[#allocation5 + $0x28] sm:$0xff]  }
  0x96   :  { %823 = vmatprep.subr.bf16.mxu0 %v1673_v57  ;;  %v1733_v57 = vld [vmem:[#allocation5 + $0x30] sm:$0xff]  }
  0x99   :  { %824 = vmatpush1.bf16.msra.mxu0 %v1671_v58  ;;  %v1734_v58 = vld [vmem:[#allocation5 + $0x38] sm:$0xff]  }
  0x9a   :  { %825 = vmatprep.subr.bf16.mxu0 %v1679_v59  ;;  %v1433_v59 = vld [vmem:[%s2055_s6] ss:$0 sm:$0xff]  ;;  %s1821_s6 = smov [#allocation7]  }
  0x9d   :  { %826 = vmatpush1.bf16.msra.mxu0 %v1677_v60 }
  0x9e   :  { %827 = vmatprep.subr.bf16.mxu0 %v1685_v61 }
  0xa1   :  { %828 = vmatpush1.bf16.msra.mxu0 %v1683_v62 }
  0xa2   :  { %829 = vmatprep.subr.bf16.mxu0 %v1691_v63 }
  0xa5   :  { %830 = vmatpush1.bf16.msra.mxu0 %v1689_v0 }
  0xa6   :  { %840 = vmatprep.subr.bf16.mxu0 %v1698_v1 }
  0xa8   :  { %832 = vmatmul.mubr.bf16.vlgmr.msra.gmra.mrb[0].mxu0 %v110_v2 }
  0xa9   :  { %841 = vmatpush1.bf16.msra.mxu0 %v1696_v3  ;;  %872 = vmatprep.mubr.bf16.mxu0 %v1818_v4  ;;  %v1442_v3 = vld [vmem:[%s2057_s8] ss:$0 sm:$0xff]  ;;  %s1307_s8 = sshll.u32 %s1821_s6, 4  ;;  %s1308_s8 = int_to_ptr.vmem [resolvable:$true] %s1307_s8 }
  0xaa   :  { %s1783_s21 = scalar_lea.vmem %s1308_s8, 16  ;;  %s1787_s22 = scalar_lea.vmem %s1308_s8, 32 }
  0xab   :  { %p1784_p2 = scmp.ne.s32.totalorder %s1308_s8, %s1783_s21  ;;  %p1788_p3 = scmp.lt.s32.totalorder %s1308_s8, %s1308_s8 }
  0xac   :  { %p1789_p4 = scmp.lt.s32.totalorder %s1787_s22, %s1783_s21 }
  0xae   :  { %p1790_p5 = por %p1789_p4, %p1788_p3 }
  0xb0   :  { %p1791_p6 = pnand %p1790_p5, %p1784_p2 }
  0xb4   :  { %1415 = vmatmul.mubr.msk.bf16.vlgmr.msra.gmra.mrb[0].mxu0 %vm713_vm0, %v112_v5 }
 0x142   :  { %v751_v13 = vpop.f32.mrb[0].mxu1 }
 0x143   :  { %v753_v14 = vpop.f32.mrb[1].mxu1  ;;  %v752_v24 = vadd.f32 %v751_v13, %v216_v18 }
 0x144   :  { %v755_v16 = vpop.f32.mrb[2].mxu1  ;;  %v754_v25 = vadd.f32 %v753_v14, %v220_v23 }
 0x145   :  { %v756_v17 = vpop.f32.mrb[3].mxu1 }
 0x187   :  { %v874_v26 = vpop.f32.mrb[0].mxu0 }
 0x188   :  { %v1532_v27 = vadd.f32 %v874_v26, %v752_v24  ;;  %v876_v28 = vpop.f32.mrb[1].mxu0 }
 0x189   :  { %v1534_v29 = vadd.f32 %v876_v28, %v754_v25  ;;  %v878_v30 = vpop.f32.mrb[2].mxu0 }
 0x18a   :  { %v881_v31 = vmax.f32 %v1532_v27, 0.0  ;;  %v879_v32 = vpop.f32.mrb[3].mxu0 }
 0x18b   :  { %v882_v33 = vmax.f32 %v1534_v29, 0.0 }
 0x18c   :  { %v883_v36 = vpack.c.bf16 %v881_v31, %v881_v31 }
 0x18d   :  { %v884_v34 = vpack.c.bf16 %v882_v33, %v882_v33 }
 0x18f   :  { %1052 = vmatprep.mubr.bf16.mxu1 %v884_v34 }
 0x190   :  { %1053 = vmatmul.mubr.bf16.vlgmr.msra.gmra.mrb[4].mxu1 %v883_v36 }
 0x191   :  { %1492 = vmatpush3.bf16.msra.mxu1 %v1719_v35  ;;  %1507 = vmatprep.mubr.msk.bf16.mxu1 %vm1820_vm1, %v1819_v12 }
 0x192   :  { %1493 = vmatprep.subr.bf16.mxu1 %v1819_v12 }
 0x195   :  { %1494 = vmatpush3.bf16.msra.mxu1 %v1720_v15 }
 0x196   :  { %1495 = vmatprep.subr.bf16.mxu1 %v1819_v12 }
 0x199   :  { %1496 = vmatpush3.bf16.msra.mxu1 %v1721_v37 }
 0x19a   :  { %1497 = vmatprep.subr.bf16.mxu1 %v1819_v12 }
 0x19d   :  { %1498 = vmatpush3.bf16.msra.mxu1 %v1722_v38 }
 0x19e   :  { %1499 = vmatprep.subr.bf16.mxu1 %v1819_v12 }
 0x1a1   :  { %1500 = vmatpush3.bf16.msra.mxu1 %v1723_v39 }
 0x1a2   :  { %1501 = vmatprep.subr.bf16.mxu1 %v1819_v12 }
 0x1a5   :  { %1502 = vmatpush3.bf16.msra.mxu1 %v1724_v40 }
 0x1a6   :  { %1503 = vmatprep.subr.bf16.mxu1 %v1819_v12 }
 0x1a9   :  { %1504 = vmatpush3.bf16.msra.mxu1 %v1725_v41 }
 0x1aa   :  { %1505 = vmatprep.subr.bf16.mxu1 %v1819_v12 }
 0x1ad   :  { %1506 = vmatpush3.bf16.msra.mxu1 %v1726_v42 }
 0x1ae   :  { %1511 = vmatprep.subr.bf16.mxu1 %v1819_v12 }
 0x263   :  { %v1467_v43 = vpop.f32.mrb[4].mxu1 }
 0x264   :  { %v1468_v21 = vpop.f32.mrb[5].mxu1 }
 0x265   :  { %v1469_v45 = vadd.f32 %v1468_v21, %v1467_v43  ;;  %v1470_v46 = vpop.f32.mrb[6].mxu1 }
 0x266   :  { %v1471_v47 = vpop.f32.mrb[7].mxu1 }
 0x267   :  { %v1055_v48 = vadd.f32 %v1469_v45, %v1416_v44 }
 0x269   :  { %v1060_v49 = vmax.f32 %v1055_v48, 0.0 }
 0x26b   :  { %v1061_v51 = vpack.c.bf16 %v1060_v49, %v1060_v49 }
 0x26d   :  { %1508 = vmatmul.mubr.bf16.vlgmr.msra.gmra.mrb[8].mxu1 %v1061_v51 }
 0x26e   :  { %1512 = vmatpush3.bf16.msra.mxu1 %v1727_v50  ;;  %1527 = vmatprep.mubr.msk.bf16.mxu1 %vm1820_vm1, %v1819_v12 }
 0x26f   :  { %1513 = vmatprep.subr.bf16.mxu1 %v1819_v12 }
 0x272   :  { %1514 = vmatpush3.bf16.msra.mxu1 %v1728_v52 }
 0x273   :  { %1515 = vmatprep.subr.bf16.mxu1 %v1819_v12 }
 0x276   :  { %1516 = vmatpush3.bf16.msra.mxu1 %v1729_v53 }
 0x277   :  { %1517 = vmatprep.subr.bf16.mxu1 %v1819_v12 }
 0x27a   :  { %1518 = vmatpush3.bf16.msra.mxu1 %v1730_v54 }
 0x27b   :  { %1519 = vmatprep.subr.bf16.mxu1 %v1819_v12 }
 0x27e   :  { %1520 = vmatpush3.bf16.msra.mxu1 %v1731_v55 }
 0x27f   :  { %1521 = vmatprep.subr.bf16.mxu1 %v1819_v12 }
 0x282   :  { %1522 = vmatpush3.bf16.msra.mxu1 %v1732_v56 }
 0x283   :  { %1523 = vmatprep.subr.bf16.mxu1 %v1819_v12 }
 0x286   :  { %1524 = vmatpush3.bf16.msra.mxu1 %v1733_v57 }
 0x287   :  { %1525 = vmatprep.subr.bf16.mxu1 %v1819_v12 }
 0x28a   :  { %1526 = vmatpush3.bf16.msra.mxu1 %v1734_v58 }
 0x340   :  { %v1167_v60 = vpop.f32.mrb[8].mxu1 }
 0x341   :  { %v1168_v61 = vadd.f32 %v1433_v59, %v1167_v60  ;;  %v1509_v62 = vpop.f32.mrb[9].mxu1 }
 0x342   :  { %v1170_v63 = vpop.f32.mrb[10].mxu1 }
 0x343   :  { %v1173_v0 = vmax.f32 %v1168_v61, 0.0  ;;  %v1510_v1 = vpop.f32.mrb[11].mxu1 }
 0x345   :  { %v1174_v2 = vpack.c.bf16 %v1173_v0, %v1173_v0 }
 0x347   :  { %1528 = vmatmul.mubr.bf16.vlgmr.msra.gmra.mrb[12].mxu1 %v1174_v2 }
 0x41a   :  { %v1280_v4 = vpop.f32.mrb[12].mxu1 }
 0x41b   :  { %v1281_v5 = vadd.f32 %v1442_v3, %v1280_v4  ;;  %v1529_v6 = vpop.f32.mrb[13].mxu1 }
 0x41c   :  { %v1283_v7 = vpop.f32.mrb[14].mxu1 }
 0x41d   :  { %v1530_v8 = vpop.f32.mrb[15].mxu1  ;;  %v1287_v9 = vsel %vm1286_vm2, %v1281_v5, -inf }
 0x41e   :  { %1288 = vmax.xlane.f32.xlu0 %v1287_v9 }
 0x4ab   :  { %v1289_v10 = vpop.xlane.xlu0 %1288 }
 0x4ac   :  { %v1290_v11 = vsub.f32 %v1281_v5, %v1289_v10 }
 0x4ae   :  { %v1291_v12 = vmul.f32 1.442695, %v1290_v11 }
 0x4b0   :  { %1735 = vpow2.f32 %v1291_v12 }
 0x4ba   :  { %v1736_v13 = vpop.eup %1735 }
 0x4bb   :  { %v1293_v14 = vsel %vm1286_vm2, %v1736_v13, 0.0 }
 0x4bc   :  { %1294 = vadd.xlane.f32.xlu0 %v1293_v14 }
 0x549   :  { %v1295_v16 = vpop.xlane.xlu0 %1294 }
 0x54a   :  { %1737 = vlog2.f32 %v1295_v16 }
 0x554   :  { %v1738_v17 = vpop.eup %1737 }
 0x555   :  { %v1297_v19 = vmul.f32 0.6931472, %v1738_v17 }
 0x557   :  { %v1298_v20 = vsub.f32 %v1290_v11, %v1297_v19 }
 0x559   :  { %v1299_v22 = vpack.c.bf16 %v1298_v20, %v1298_v20 }
 0x55b   :  { %1300 = vst [vmem:[#allocation7] sm:$0x1] %v1299_v22 }
 0x55c   :  { %1794 = shalt.err (!%p1791_p6)
}
 0x55d   :  { %s1795_s25 = scalar_lea.hbm %s2058_s9, 16 }
 0x55e   :  { %p1796_p7 = scmp.ne.s32.totalorder %s2058_s9, %s1795_s25  ;;  %p1799_p8 = scmp.lt.u32.totalorder %s1795_s25, %s2058_s9 }
 0x560   :  { %p1801_p9 = pnand %p1799_p8, %p1796_p7 }
 0x562   :  { %1804 = shalt.err (!%p1801_p9)
}
 0x563   :  { %1310 = dma.vmem_to_hbm [thread:$0]  %s1308_s8, 16, %s2058_s9, [#allocation4]  }
 0x564   :  { %1809 = dma.done.wait [#allocation4], 16  }
 0x565   :  { %1810 = vsyncadd [#allocation4], 4294967280 }
 0x566   :  { %1314 = vsyncpa [#allocation3], 1 }
 0x567   :  { %1315 = vsyncpa [#allocation6], 1 }
 0x568   :  { %1316 = vsyncpa [#allocation4], 1 }

</bundles_post_ra>
